<compile_context>
chip_gen: v7x
topology: tpu7x:2x2x1
jax: 0.10.0
libtpu: 0.0.40
codegen_flags: <defaults>
</compile_context>

<pallas_src>
import functools

import jax
import jax.numpy as jnp
from jax.experimental import pallas as pl
from jax.experimental.pallas import tpu as pltpu


_LANE = 128


def _round_up(x, m):
    return (x + m - 1) // m * m


def critic_kernel(s_ref, a_ref, w1s_ref, w1a_ref, b1_ref, w2_ref, b2_ref, o_ref):
    # s_ref  : [TB, s_size]     a_ref  : [TB, a_size]
    # w1s_ref: [s_size, Hp]     w1a_ref: [a_size, Hp]   (Hp = hidden padded to 128)
    # b1_ref : [1, Hp]          w2_ref : [Hp, 1]        b2_ref: [1, 1] (SMEM scalar)
    # o_ref  : [TB, 1]
    h = jnp.dot(s_ref[...], w1s_ref[...], preferred_element_type=jnp.float32)
    h = h + jnp.dot(a_ref[...], w1a_ref[...], preferred_element_type=jnp.float32)
    h = jnp.maximum(h + b1_ref[...], 0.0)                       # bias + ReLU [TB, Hp]

    # fc2 as an MXU dot against the [Hp, 1] weight column (padding rows are
    # zero, so padded hidden units contribute nothing).
    q = jnp.dot(h, w2_ref[...], preferred_element_type=jnp.float32)   # [TB, 1]
    o_ref[...] = (q + b2_ref[0, 0]).astype(o_ref.dtype)


@functools.partial(jax.jit, static_argnames=("block_rows",))
def critic_forward(s, a, params, *, block_rows=2048):
    """Pallas forward pass equivalent to Critic.forward(s, a) -> [B, 1] f32."""
    w1_s, w1_a, b1, w2_col, b2 = params
    B, s_size = s.shape
    a_size = a.shape[1]
    hp = w1_s.shape[1]

    # Batch tile: 8-aligned, capped by block_rows, and also capped by
    # ceil(B/2) so the grid has >= 2 steps whenever B allows (keeps both
    # v7x TensorCores busy on the "parallel" batch axis).
    half = _round_up(pl.cdiv(B, 2), 8)
    tb = max(8, min(_round_up(block_rows, 8), half))
    num_tiles = pl.cdiv(B, tb)

    out = pl.pallas_call(
        critic_kernel,
        out_shape=jax.ShapeDtypeStruct((B, 1), jnp.float32),
        grid=(num_tiles,),
        in_specs=[
            pl.BlockSpec((tb, s_size), lambda i: (i, 0)),       # batch-tiled
            pl.BlockSpec((tb, a_size), lambda i: (i, 0)),       # batch-tiled
            pl.BlockSpec((s_size, hp), lambda i: (0, 0)),       # resident weights
            pl.BlockSpec((a_size, hp), lambda i: (0, 0)),
            pl.BlockSpec((1, hp), lambda i: (0, 0)),
            pl.BlockSpec((hp, 1), lambda i: (0, 0)),
            pl.BlockSpec(memory_space=pltpu.MemorySpace.SMEM),  # b2 scalar
        ],
        out_specs=pl.BlockSpec((tb, 1), lambda i: (i, 0)),
        compiler_params=pltpu.CompilerParams(
            dimension_semantics=("parallel",),
            vmem_limit_bytes=32 * 1024 * 1024,
        ),
    )(s, a, w1_s, w1_a, b1, w2_col, b2)
    return out


def init_critic_params(key, s_size, a_size):
    """Init mirroring the PyTorch module, returned in kernel layout.

    PyTorch:
      fc1 = Linear(s_size + a_size, (s_size + a_size) // 2), weight ~ N(0, 0.1)
      fc2 = Linear((s_size + a_size) // 2, 1),               weight ~ N(0, 0.1)
      biases: default U(-1/sqrt(fan_in), 1/sqrt(fan_in))

    Kernel layout: fc1 weight split by input stream (state / action) and
    transposed to [in, Hp]; fc2 weight packed as an [Hp, 1] column; hidden dim
    zero-padded to a multiple of 128 lanes (b1 / w2 padding is zero, inert).
    """
    d_in = s_size + a_size
    hidden = d_in // 2
    hp = _round_up(hidden, _LANE)
    k1, k2, k3, k4 = jax.random.split(key, 4)

    w1 = 0.1 * jax.random.normal(k1, (hidden, d_in), jnp.float32)   # torch [out, in]
    w2 = 0.1 * jax.random.normal(k2, (1, hidden), jnp.float32)
    bound1 = 1.0 / float(d_in) ** 0.5
    bound2 = 1.0 / float(hidden) ** 0.5
    b1 = jax.random.uniform(k3, (hidden,), jnp.float32, -bound1, bound1)
    b2 = jax.random.uniform(k4, (1,), jnp.float32, -bound2, bound2)

    w1_s = jnp.zeros((s_size, hp), jnp.float32).at[:, :hidden].set(w1[:, :s_size].T)
    w1_a = jnp.zeros((a_size, hp), jnp.float32).at[:, :hidden].set(w1[:, s_size:].T)
    b1_p = jnp.zeros((1, hp), jnp.float32).at[0, :hidden].set(b1)
    w2_c = jnp.zeros((hp, 1), jnp.float32).at[:hidden, 0].set(w2[0])
    b2_p = b2.reshape(1, 1)

    packed = (w1_s, w1_a, b1_p, w2_c, b2_p)   # kernel-layout params
    dense = (w1, b1, w2, b2)                  # PyTorch-layout params (reference)
    return packed, dense


if __name__ == "__main__":
    s_size, a_size = 24, 8          # hidden = (24 + 8) // 2 = 16
    batch = 67                      # deliberately not 8-aligned: exercises the
                                    # partial last block + masked output store

    key = jax.random.PRNGKey(0)
    k_params, k_s, k_a = jax.random.split(key, 3)

    packed, dense = init_critic_params(k_params, s_size, a_size)
    s = jax.random.normal(k_s, (batch, s_size), jnp.float32)
    a = jax.random.normal(k_a, (batch, a_size), jnp.float32)

    # tb = min(2048, round_up(ceil(67/2), 8)) = 40 -> grid=(2,), last block partial.
    q = critic_forward(s, a, packed)
    jax.block_until_ready(q)

    # Pure-JAX reference of the original PyTorch math (concat form).
    w1, b1, w2, b2 = dense
    x = jnp.concatenate([s, a], axis=1)
    ref = jnp.maximum(x @ w1.T + b1, 0.0) @ w2.T + b2
    assert q.shape == (batch, 1)
    assert jnp.allclose(q, ref, atol=1e-4, rtol=1e-4), float(jnp.max(jnp.abs(q - ref)))

    print("KERNEL_OK")
</pallas_src>

<mosaic_0001>
module attributes {stable_mosaic.version = 11 : i64} {
  func.func @critic_kernel(%arg0: i32, %arg1: memref<40x24xf32, #tpu.memory_space<vmem>>, %arg2: memref<40x8xf32, #tpu.memory_space<vmem>>, %arg3: memref<24x128xf32, #tpu.memory_space<vmem>>, %arg4: memref<8x128xf32, #tpu.memory_space<vmem>>, %arg5: memref<1x128xf32, #tpu.memory_space<vmem>>, %arg6: memref<128x1xf32, #tpu.memory_space<vmem>>, %arg7: memref<1x1xf32, #tpu.memory_space<smem>>, %arg8: memref<40x1xf32, #tpu.memory_space<vmem>>) attributes {dimension_semantics = [#tpu.dimension_semantics<parallel>], iteration_bounds = array<i64: 2>, scalar_prefetch = 0 : i64, scratch_operands = 0 : i64, tpu.core_type = #tpu.core_type<tc>, window_params = [{transform_indices = @transform_0, window_bounds = array<i64: 40, 24>}, {transform_indices = @transform_1, window_bounds = array<i64: 40, 8>}, {pipeline_mode = #tpu.pipeline_mode<synchronous>, transform_indices = @transform_2, window_bounds = array<i64: 24, 128>}, {pipeline_mode = #tpu.pipeline_mode<synchronous>, transform_indices = @transform_3, window_bounds = array<i64: 8, 128>}, {pipeline_mode = #tpu.pipeline_mode<synchronous>, transform_indices = @transform_4, window_bounds = array<i64: 1, 128>}, {pipeline_mode = #tpu.pipeline_mode<synchronous>, transform_indices = @transform_5, window_bounds = array<i64: 128, 1>}, {transform_indices = @transform_6, window_bounds = array<i64: 1, 1>}, {transform_indices = @transform_7, window_bounds = array<i64: 40, 1>}]} {
    %c0 = arith.constant 0 : index
    %c0_0 = arith.constant 0 : index
    %0 = vector.load %arg1[%c0, %c0_0] : memref<40x24xf32, #tpu.memory_space<vmem>>, vector<40x24xf32>
    %c0_1 = arith.constant 0 : index
    %c0_2 = arith.constant 0 : index
    %1 = vector.load %arg3[%c0_1, %c0_2] : memref<24x128xf32, #tpu.memory_space<vmem>>, vector<24x128xf32>
    %cst = arith.constant dense<0.000000e+00> : vector<40x128xf32>
    %2 = tpu.matmul %0, %1, %cst {dimension_numbers = #tpu.dot_dimension_numbers<[1], [0], [0], [1], [0, 0, 1, 1], [], []>} : vector<40x24xf32>, vector<24x128xf32>, vector<40x128xf32> -> vector<40x128xf32>
    %c0_3 = arith.constant 0 : index
    %c0_4 = arith.constant 0 : index
    %3 = vector.load %arg2[%c0_3, %c0_4] : memref<40x8xf32, #tpu.memory_space<vmem>>, vector<40x8xf32>
    %c0_5 = arith.constant 0 : index
    %c0_6 = arith.constant 0 : index
    %4 = vector.load %arg4[%c0_5, %c0_6] : memref<8x128xf32, #tpu.memory_space<vmem>>, vector<8x128xf32>
    %cst_7 = arith.constant dense<0.000000e+00> : vector<40x128xf32>
    %5 = tpu.matmul %3, %4, %cst_7 {dimension_numbers = #tpu.dot_dimension_numbers<[1], [0], [0], [1], [0, 0, 1, 1], [], []>} : vector<40x8xf32>, vector<8x128xf32>, vector<40x128xf32> -> vector<40x128xf32>
    %6 = arith.addf %2, %5 : vector<40x128xf32>
    %c0_8 = arith.constant 0 : index
    %c0_9 = arith.constant 0 : index
    %7 = vector.load %arg5[%c0_8, %c0_9] : memref<1x128xf32, #tpu.memory_space<vmem>>, vector<1x128xf32>
    %8 = vector.broadcast %7 : vector<1x128xf32> to vector<40x128xf32>
    %9 = arith.addf %6, %8 : vector<40x128xf32>
    %cst_10 = arith.constant 0.000000e+00 : f32
    %10 = vector.broadcast %cst_10 : f32 to vector<40x128xf32>
    %11 = arith.maximumf %9, %10 : vector<40x128xf32>
    %c0_11 = arith.constant 0 : index
    %c0_12 = arith.constant 0 : index
    %12 = vector.load %arg6[%c0_11, %c0_12] : memref<128x1xf32, #tpu.memory_space<vmem>>, vector<128x1xf32>
    %cst_13 = arith.constant dense<0.000000e+00> : vector<40x1xf32>
    %13 = tpu.matmul %11, %12, %cst_13 {dimension_numbers = #tpu.dot_dimension_numbers<[1], [0], [0], [1], [0, 0, 1, 1], [], []>} : vector<40x128xf32>, vector<128x1xf32>, vector<40x1xf32> -> vector<40x1xf32>
    %c0_14 = arith.constant 0 : index
    %c0_15 = arith.constant 0 : index
    %14 = memref.load %arg7[%c0_14, %c0_15] : memref<1x1xf32, #tpu.memory_space<smem>>
    %15 = vector.broadcast %14 : f32 to vector<40x1xf32>
    %16 = arith.addf %13, %15 : vector<40x1xf32>
    %c0_16 = arith.constant 0 : index
    %c0_17 = arith.constant 0 : index
    %17 = vector.load %arg8[%c0_16, %c0_17] : memref<40x1xf32, #tpu.memory_space<vmem>>, vector<40x1xf32>
    tpu.vector_store %arg8[%c0_16, %c0_17], %16 {strides = array<i32>} : memref<40x1xf32, #tpu.memory_space<vmem>>, vector<40x1xf32>,
    return
  }
  func.func @transform_0(%arg0: i32) -> (i32, i32) {
    %c0_i32 = arith.constant 0 : i32
    %c0_i32_0 = arith.constant 0 : i32
    return %arg0, %c0_i32 : i32, i32
  }
  func.func @transform_1(%arg0: i32) -> (i32, i32) {
    %c0_i32 = arith.constant 0 : i32
    %c0_i32_0 = arith.constant 0 : i32
    return %arg0, %c0_i32 : i32, i32
  }
  func.func @transform_2(%arg0: i32) -> (i32, i32) {
    %c0_i32 = arith.constant 0 : i32
    %c0_i32_0 = arith.constant 0 : i32
    %c0_i32_1 = arith.constant 0 : i32
    return %c0_i32, %c0_i32_0 : i32, i32
  }
  func.func @transform_3(%arg0: i32) -> (i32, i32) {
    %c0_i32 = arith.constant 0 : i32
    %c0_i32_0 = arith.constant 0 : i32
    %c0_i32_1 = arith.constant 0 : i32
    return %c0_i32, %c0_i32_0 : i32, i32
  }
  func.func @transform_4(%arg0: i32) -> (i32, i32) {
    %c0_i32 = arith.constant 0 : i32
    %c0_i32_0 = arith.constant 0 : i32
    %c0_i32_1 = arith.constant 0 : i32
    return %c0_i32, %c0_i32_0 : i32, i32
  }
  func.func @transform_5(%arg0: i32) -> (i32, i32) {
    %c0_i32 = arith.constant 0 : i32
    %c0_i32_0 = arith.constant 0 : i32
    %c0_i32_1 = arith.constant 0 : i32
    return %c0_i32, %c0_i32_0 : i32, i32
  }
  func.func @transform_6(%arg0: i32) -> (i32, i32) {
    %c0_i32 = arith.constant 0 : i32
    %c0_i32_0 = arith.constant 0 : i32
    %c0_i32_1 = arith.constant 0 : i32
    return %c0_i32, %c0_i32_0 : i32, i32
  }
  func.func @transform_7(%arg0: i32) -> (i32, i32) {
    %c0_i32 = arith.constant 0 : i32
    %c0_i32_0 = arith.constant 0 : i32
    return %arg0, %c0_i32 : i32, i32
  }
}

</mosaic_0001>

<bundles_post_ra>
// kernel: critic_forward.1
= control target key start
LH: loop header
LB: loop body
LE: loop exit
PB: predicated region body
PF: predicated region fallthrough
CT: control target
= control target key end

     0   :  { %s1614_s0 = inlined_call_operand.vmem [shape: f32[67,24], index: 0, kind: input, shape index: {}]   ;;  %s1615_s1 = inlined_call_operand.vmem [shape: f32[67,8], index: 1, kind: input, shape index: {}]   ;;  %s1616_s2 = inlined_call_operand.vmem [shape: f32[24,128], index: 2, kind: input, shape index: {}]   ;;  %s1617_s3 = inlined_call_operand.vmem [shape: f32[8,128], index: 3, kind: input, shape index: {}]   ;;  %s1618_s4 = inlined_call_operand.vmem [shape: f32[1,128], index: 4, kind: input, shape index: {}]   ;;  %s1619_s5 = inlined_call_operand.vmem [shape: f32[128,1], index: 5, kind: input, shape index: {}]   ;;  %s1620_s6 = inlined_call_operand.<no memory space> [shape: f32[1,1], index: 6, kind: input, shape index: {}]   ;;  %s1621_s7 = inlined_call_operand.vmem [shape: f32[67,1], index: 7, kind: output, shape index: {}]  }
   0x1   :  { %12 = sst [smem:[#allocation2]] %s1620_s6 }
   0x2   :  { %s1369_s26 = smov 0   ;;  %s1371_s27 = smov 0  }
   0x3   :  { %s1373_s28 = smov 0  }
   0x4 LB: > { %s1382_s6 = sadd.s32 4294967295, %s1289_s28   ;;  %s1384_s29 = sadd.s32 1, %s1289_s28   ;;  %s1289_s28 = sphi %s1373_s28, %s1628_s28   ;;  %s1285_s27 = sphi %s1371_s27, %s1627_s27   ;;  %s1281_s26 = sphi %s1369_s26, %s1626_s26  }
   0x5   : > { %s179_s30 = ssub.s32 %s1289_s28, %s1384_s29  ;;  %s182_s8 = sadd.s32 1, %s1285_s27 }
   0x6   : > { %p180_p0 = scmp.eq.s32.totalorder %s179_s30, 0  ;;  %p192_p1 = scmp.ne.s32.totalorder %s1285_s27, %s1281_s26 }
   0x7   : > { %p193_p2 = scmp.eq.s32.totalorder %s1382_s6, 1  ;;  %p948_p3 = scmp.ge.s32.totalorder %s1289_s28, 1 }
   0x8   : > { %s1392_s9 = scalar_select %p180_p0, %s1285_s27, %s182_s8  }
   0x9   : > { %p1394_p4 = por %p193_p2, %p192_p1  ;;  %p266_p5 = scmp.lt.s32.totalorder %s1289_s28, 3 }
   0xb   : > { %p267_p6 = pnand %p948_p3, %p266_p5 }
   0xc   : > { %v348_v0 = vld [vmem:[%s1616_s2] sm:$0xff] (!%p267_p6)  ;;  %v349_v1 = vld [vmem:[%s1616_s2 + $0x8] sm:$0xff] (!%p267_p6)  ;;  %v1323_v3 = vmov (!%p267_p6), 0.0|0.0   ;;  %v1324_v5 = vmov (!%p267_p6), 0.0   ;;  %s1410_s17 = smul.u32 (!%p267_p6), 5, %s1382_s6  ;;  %vm1325_vm0 = vmmov (!%p267_p6), 0  }
   0xd   : > { %270 = sbr.rel (%p267_p6) target bundleno = 536 (0x218), region = 48  ;;  %v356_v2 = vld [vmem:[%s1617_s3] sm:$0xff] (!%p267_p6)  ;;  %1095 = vmatprep.subr.bf16.mxu1 (!%p267_p6), %v1323_v3  ;;  %v1096_v4 = vpack.c.bf16 (!%p267_p6), %v349_v1, %v348_v0  ;;  %1010 = vmatprep.subr.mxu0 (!%p267_p6), %v1324_v5  ;;  %v350_v6 = vld [vmem:[%s1616_s2 + $0x10] sm:$0xff] (!%p267_p6)  ;;  %v587_v8 = vld [vmem:[%s1619_s5 + $0x8] sm:$0xff] (!%p267_p6)  ;;  %vm357_vm1 = vcmask (!%p267_p6), 64512   ;;  %vm463_vm2 = vcmask (!%p267_p6), 195584  }
   0xe   : > { %1011 = vmatpush3.msra.mxu0 (!%p267_p6), %v356_v2  ;;  %1012 = vmatprep.mubr.msk.f32.mxu0 (!%p267_p6), %vm1325_vm0, %v1324_v5  ;;  %p315_p7 = scmp.lt.s32.totalorder (!%p267_p6), %s1410_s17, 8  ;;  %v586_v7 = vld [vmem:[%s1619_s5] sm:$0xff] (!%p267_p6)  ;;  %v588_v10 = vld [vmem:[%s1619_s5 + $0x10] sm:$0xff] (!%p267_p6)  ;;  %v589_v13 = vld [vmem:[%s1619_s5 + $0x18] sm:$0xff] (!%p267_p6)  ;;  %s602_s11 = sld [smem:[#allocation2]] (!%p267_p6)  ;;  %vm694_vm3 = vcmask (!%p267_p6), 7168  }
   0xf   : > { %1097 = vmatpush3.bf16.msra.mxu1 (!%p267_p6), %v1096_v4  ;;  %1033 = vmatprep.mubr.msk.f32.mxu1 (!%p267_p6), %vm1325_vm0, %v1324_v5  ;;  %v1099_v9 = vpack.c.bf16 (!%p267_p6), %v587_v8, %v586_v7  ;;  %v1102_v16 = vpack.c.bf16 (!%p267_p6), %v589_v13, %v588_v10  ;;  %v590_v17 = vld [vmem:[%s1619_s5 + $0x20] sm:$0xff] (!%p267_p6)  ;;  %v591_v18 = vld [vmem:[%s1619_s5 + $0x28] sm:$0xff] (!%p267_p6)  ;;  %v592_v22 = vld [vmem:[%s1619_s5 + $0x30] sm:$0xff] (!%p267_p6)  ;;  %s307_s12 = sand.u32 (!%p267_p6), 1, %s1281_s26  }
  0x10   : > { %1031 = vmatprep.subr.mxu1 (!%p267_p6), %v1324_v5  ;;  %1098 = vmatprep.subr.bf16.mxu0 (!%p267_p6), %v1323_v3  ;;  %v1105_v21 = vpack.c.bf16 (!%p267_p6), %v591_v18, %v590_v17  ;;  %v593_v23 = vld [vmem:[%s1619_s5 + $0x38] sm:$0xff] (!%p267_p6)  ;;  %v594_v27 = vld [vmem:[%s1619_s5 + $0x40] sm:$0xff] (!%p267_p6)  ;;  %v595_v28 = vld [vmem:[%s1619_s5 + $0x48] sm:$0xff] (!%p267_p6)  ;;  %s1138_s14 = smul.u32 (!%p267_p6), 40, %s307_s12 }
  0x11   : > { %v1108_v26 = vpack.c.bf16 (!%p267_p6), %v593_v23, %v592_v22  ;;  %v1111_v31 = vpack.c.bf16 (!%p267_p6), %v595_v28, %v594_v27  ;;  %v596_v32 = vld [vmem:[%s1619_s5 + $0x50] sm:$0xff] (!%p267_p6)  ;;  %v597_v33 = vld [vmem:[%s1619_s5 + $0x58] sm:$0xff] (!%p267_p6)  ;;  %v598_v35 = vld [vmem:[%s1619_s5 + $0x60] sm:$0xff] (!%p267_p6) }
  0x12   : > { %v1114_v34 = vpack.c.bf16 (!%p267_p6), %v597_v33, %v596_v32  ;;  %v599_v36 = vld [vmem:[%s1619_s5 + $0x68] sm:$0xff] (!%p267_p6)  ;;  %v600_v38 = vld [vmem:[%s1619_s5 + $0x70] sm:$0xff] (!%p267_p6)  ;;  %v601_v39 = vld [vmem:[%s1619_s5 + $0x78] sm:$0xff] (!%p267_p6)  ;;  %s1546_s15 = scalar_lea.vmem (!%p267_p6), [#allocation3], %s1138_s14  }
  0x13   : > { %1032 = vmatpush3.msra.mxu1 (!%p267_p6), %v350_v6  ;;  %v1117_v37 = vpack.c.bf16 (!%p267_p6), %v599_v36, %v598_v35  ;;  %v1120_v40 = vpack.c.bf16 (!%p267_p6), %v601_v39, %v600_v38  ;;  %v961_v43 = vld [vmem:[%s1618_s4] ss:$0 sm:$0xff] (!%p267_p6) }
  0x14   : > { %s316_s20 = scalar_select %p315_p7, %s1410_s17, 8  ;;  %1122 = vmatprep.subr.bf16.mxu1 %v1323_v3 }
  0x15   : > { %s708_s26 = ssub.s32 (%p1394_p4), 9, %s1410_s17  ;;  %s974_s16 = smul.u32 (%p1394_p4), 40, %s1382_s6 }
  0x16   : > { %s949_s25 = sshll.u32 %s316_s20, 3  ;;  %p709_p8 = scmp.lt.s32.totalorder (%p1394_p4), %s708_s26, 5 }
  0x17   : > { %s1432_s8 = scalar_lea.vmem %s1615_s1, %s949_s25  ;;  %s1437_s13 = scalar_lea.vmem %s1614_s0, %s949_s25 }
  0x18   : > { %v351_v11 = vld [vmem:[%s1432_s8] sm:$0xff]  ;;  %v352_v14 = vld [vmem:[%s1432_s8 + $0x8] sm:$0xff]  ;;  %v353_v19 = vld [vmem:[%s1432_s8 + $0x10] sm:$0xff] }
  0x19   : > { %v343_v12 = vld [vmem:[%s1437_s13] sm:$0xff]  ;;  %1013 = vmatmul.mubr.msk.f32.vlgmr.msra.gmra.mrb[0].mxu0 %vm357_vm1, %v351_v11  ;;  %v344_v15 = vld [vmem:[%s1437_s13 + $0x8] sm:$0xff]  ;;  %v345_v20 = vld [vmem:[%s1437_s13 + $0x10] sm:$0xff] }
  0x1a   : > { %1034 = vmatmul.mubr.msk.f32.vlgmr.msra.gmra.mrb[0].mxu1 %vm463_vm2, %v343_v12  ;;  %1015 = vmatprep.mubr.msk.f32.mxu0 %vm1325_vm0, %v1324_v5  ;;  %v354_v24 = vld [vmem:[%s1432_s8 + $0x18] sm:$0xff]  ;;  %v355_v29 = vld [vmem:[%s1432_s8 + $0x20] sm:$0xff]  ;;  %s1565_s8 = scalar_lea.vmem (%p1394_p4), %s1621_s7, %s974_s16  }
  0x1b   : > { %1036 = vmatprep.mubr.msk.f32.mxu1 %vm1325_vm0, %v1324_v5  ;;  %1100 = vmatpush3.bf16.msra.mxu0 %v1099_v9  ;;  %v346_v25 = vld [vmem:[%s1437_s13 + $0x18] sm:$0xff]  ;;  %v347_v30 = vld [vmem:[%s1437_s13 + $0x20] sm:$0xff] }
  0x1c   : > { %1130 = vmatpush3.bf16.msra.mxu1 %v1099_v9  ;;  %1101 = vmatprep.subr.bf16.mxu0 %v1323_v3 }
  0x1d   : > { %1123 = vmatprep.subr.bf16.mxu1 %v1323_v3  ;;  %1016 = vmatmul.mubr.msk.f32.gmra.mrb[2].mxu0 %vm357_vm1, %v352_v14  ;;  %v603_v14 = vstv %s602_s11 }
  0x1e   : > { %1037 = vmatmul.mubr.msk.f32.gmra.mrb[2].mxu1 %vm463_vm2, %v344_v15  ;;  %1018 = vmatprep.mubr.msk.f32.mxu0 %vm1325_vm0, %v1324_v5 }
  0x1f   : > { %1039 = vmatprep.mubr.msk.f32.mxu1 %vm1325_vm0, %v1324_v5  ;;  %1103 = vmatpush3.bf16.msra.mxu0 %v1102_v16 }
  0x20   : > { %1131 = vmatpush3.bf16.msra.mxu1 %v1102_v16  ;;  %1104 = vmatprep.subr.bf16.mxu0 %v1323_v3 }
  0x21   : > { %1124 = vmatprep.subr.bf16.mxu1 %v1323_v3  ;;  %1019 = vmatmul.mubr.msk.f32.gmra.mrb[4].mxu0 %vm357_vm1, %v353_v19 }
  0x22   : > { %1040 = vmatmul.mubr.msk.f32.gmra.mrb[4].mxu1 %vm463_vm2, %v345_v20  ;;  %1021 = vmatprep.mubr.msk.f32.mxu0 %vm1325_vm0, %v1324_v5 }
  0x23   : > { %1042 = vmatprep.mubr.msk.f32.mxu1 %vm1325_vm0, %v1324_v5  ;;  %1106 = vmatpush3.bf16.msra.mxu0 %v1105_v21 }
  0x24   : > { %1132 = vmatpush3.bf16.msra.mxu1 %v1105_v21  ;;  %1107 = vmatprep.subr.bf16.mxu0 %v1323_v3 }
  0x25   : > { %1125 = vmatprep.subr.bf16.mxu1 %v1323_v3  ;;  %1022 = vmatmul.mubr.msk.f32.gmra.mrb[6].mxu0 %vm357_vm1, %v354_v24 }
  0x26   : > { %1043 = vmatmul.mubr.msk.f32.gmra.mrb[6].mxu1 %vm463_vm2, %v346_v25  ;;  %1024 = vmatprep.mubr.msk.f32.mxu0 %vm1325_vm0, %v1324_v5 }
  0x27   : > { %1045 = vmatprep.mubr.msk.f32.mxu1 %vm1325_vm0, %v1324_v5  ;;  %1109 = vmatpush3.bf16.msra.mxu0 %v1108_v26 }
  0x28   : > { %1133 = vmatpush3.bf16.msra.mxu1 %v1108_v26  ;;  %1110 = vmatprep.subr.bf16.mxu0 %v1323_v3 }
  0x29   : > { %1126 = vmatprep.subr.bf16.mxu1 %v1323_v3  ;;  %1025 = vmatmul.mubr.msk.f32.gmra.mrb[8].mxu0 %vm357_vm1, %v355_v29 }
  0x2a   : > { %1046 = vmatmul.mubr.msk.f32.gmra.mrb[8].mxu1 %vm463_vm2, %v347_v30  ;;  %1080 = vmatprep.mubr.msk.f32.mxu0 %vm1325_vm0, %v1324_v5 }
  0x2b   : > { %1089 = vmatprep.mubr.msk.f32.mxu1 %vm1325_vm0, %v1324_v5  ;;  %1112 = vmatpush3.bf16.msra.mxu0 %v1111_v31 }
  0x2c   : > { %1134 = vmatpush3.bf16.msra.mxu1 %v1111_v31  ;;  %1113 = vmatprep.subr.bf16.mxu0 %v1323_v3 }
  0x2d   : > { %1127 = vmatprep.subr.bf16.mxu1 %v1323_v3 }
  0x2f   : > { %1115 = vmatpush3.bf16.msra.mxu0 %v1114_v34 }
  0x30   : > { %1135 = vmatpush3.bf16.msra.mxu1 %v1114_v34  ;;  %1116 = vmatprep.subr.bf16.mxu0 %v1323_v3 }
  0x31   : > { %1128 = vmatprep.subr.bf16.mxu1 %v1323_v3 }
  0x33   : > { %1118 = vmatpush3.bf16.msra.mxu0 %v1117_v37 }
  0x34   : > { %1136 = vmatpush3.bf16.msra.mxu1 %v1117_v37  ;;  %1119 = vmatprep.subr.bf16.mxu0 %v1323_v3 }
  0x35   : > { %1129 = vmatprep.subr.bf16.mxu1 %v1323_v3 }
  0x37   : > { %1121 = vmatpush3.bf16.msra.mxu0 %v1120_v40 }
  0x38   : > { %1137 = vmatpush3.bf16.msra.mxu1 %v1120_v40 }
  0xec   : > { %v439_v41 = vpop.f32.mrb[0].mxu0 }
  0xed   : > { %v545_v42 = vpop.f32.mrb[0].mxu1  ;;  %v1014_v45 = vpop.f32.mrb[1].mxu0 }
  0xee   : > { %v546_v44 = vadd.f32 %v545_v42, %v439_v41  ;;  %v1035_v46 = vpop.f32.mrb[1].mxu1 }
  0xf0   : > { %v576_v47 = vadd.f32 %v961_v43, %v546_v44  ;;  %v444_v48 = vpop.f32.mrb[2].mxu0 }
  0xf1   : > { %v550_v49 = vpop.f32.mrb[2].mxu1  ;;  %v1017_v52 = vpop.f32.mrb[3].mxu0 }
  0xf2   : > { %v581_v50 = vmax.f32 %v576_v47, 0.0  ;;  %v551_v51 = vadd.f32 %v550_v49, %v444_v48  ;;  %v1038_v53 = vpop.f32.mrb[3].mxu1 }
  0xf4   : > { %v577_v54 = vadd.f32 %v961_v43, %v551_v51  ;;  %1081 = vmatmul.mubr.f32.vlgmr.msra.gmra.mrb[10].mxu0 %v581_v50  ;;  %v449_v55 = vpop.f32.mrb[4].mxu0 }
  0xf5   : > { %v555_v56 = vpop.f32.mrb[4].mxu1  ;;  %1083 = vmatprep.mubr.msk.f32.mxu0 %vm1325_vm0, %v1324_v5  ;;  %v1020_v59 = vpop.f32.mrb[5].mxu0 }
  0xf6   : > { %v582_v57 = vmax.f32 %v577_v54, 0.0  ;;  %v556_v58 = vadd.f32 %v555_v56, %v449_v55  ;;  %v1041_v60 = vpop.f32.mrb[5].mxu1 }
  0xf8   : > { %v578_v61 = vadd.f32 %v961_v43, %v556_v58  ;;  %1084 = vmatmul.mubr.f32.gmra.mrb[12].mxu0 %v582_v57  ;;  %v454_v62 = vpop.f32.mrb[6].mxu0 }
  0xf9   : > { %v560_v63 = vpop.f32.mrb[6].mxu1  ;;  %1086 = vmatprep.mubr.msk.f32.mxu0 %vm1325_vm0, %v1324_v5  ;;  %v1023_v2 = vpop.f32.mrb[7].mxu0 }
  0xfa   : > { %v583_v0 = vmax.f32 %v578_v61, 0.0  ;;  %v561_v1 = vadd.f32 %v560_v63, %v454_v62  ;;  %v1044_v3 = vpop.f32.mrb[7].mxu1 }
  0xfc   : > { %v579_v4 = vadd.f32 %v961_v43, %v561_v1  ;;  %1087 = vmatmul.mubr.f32.gmra.mrb[14].mxu0 %v583_v0  ;;  %v459_v6 = vpop.f32.mrb[8].mxu0 }
  0xfd   : > { %v565_v7 = vpop.f32.mrb[8].mxu1  ;;  %v1026_v10 = vpop.f32.mrb[9].mxu0 }
  0xfe   : > { %v584_v8 = vmax.f32 %v579_v4, 0.0  ;;  %v566_v9 = vadd.f32 %v565_v7, %v459_v6  ;;  %v1047_v11 = vpop.f32.mrb[9].mxu1 }
 0x100   : > { %v580_v12 = vadd.f32 %v961_v43, %v566_v9  ;;  %1090 = vmatmul.mubr.f32.vlgmr.msra.gmra.mrb[10].mxu1 %v584_v8 }
 0x101   : > { %1092 = vmatprep.mubr.msk.f32.mxu1 %vm1325_vm0, %v1324_v5 }
 0x102   : > { %v585_v13 = vmax.f32 %v580_v12, 0.0 }
 0x104   : > { %1093 = vmatmul.mubr.f32.gmra.mrb[12].mxu1 %v585_v13 }
 0x1c7   : > { %v670_v15 = vpop.f32.mrb[10].mxu0 }
 0x1c8   : > { %v671_v16 = vadd.f32 %v670_v15, %v603_v14  ;;  %v1082_v17 = vpop.f32.mrb[11].mxu0 }
 0x1ca   : > { %695 = vst.msk [vmem:[%s1546_s15] sm:$0xff] %vm694_vm3, %v671_v16 }
 0x1cb   : > { %v675_v5 = vpop.f32.mrb[12].mxu0 }
 0x1cc   : > { %v676_v18 = vadd.f32 %v675_v5, %v603_v14  ;;  %v1085_v19 = vpop.f32.mrb[13].mxu0 }
 0x1ce   : > { %696 = vst.msk [vmem:[%s1546_s15 + $0x8] sm:$0xff] %vm694_vm3, %v676_v18 }
 0x1cf   : > { %v680_v20 = vpop.f32.mrb[14].mxu0 }
 0x1d0   : > { %v681_v21 = vadd.f32 %v680_v20, %v603_v14  ;;  %v1088_v22 = vpop.f32.mrb[15].mxu0 }
 0x1d2   : > { %697 = vst.msk [vmem:[%s1546_s15 + $0x10] sm:$0xff] %vm694_vm3, %v681_v21 }
 0x1d3   : > { %v685_v23 = vpop.f32.mrb[10].mxu1 }
 0x1d4   : > { %v686_v24 = vadd.f32 %v685_v23, %v603_v14  ;;  %v1091_v25 = vpop.f32.mrb[11].mxu1  ;;  %706 = sbr.rel (!%p1394_p4) target bundleno = 536 (0x218), region = 52 }
 0x1d6   : > { %698 = vst.msk [vmem:[%s1546_s15 + $0x18] sm:$0xff] %vm694_vm3, %v686_v24 }
 0x1d7   : > { %v690_v26 = vpop.f32.mrb[12].mxu1 }
 0x1d8   : > { %v691_v27 = vadd.f32 %v690_v26, %v603_v14  ;;  %v1094_v28 = vpop.f32.mrb[13].mxu1 }
 0x1da   : > { %699 = vst.msk [vmem:[%s1546_s15 + $0x20] sm:$0xff] %vm694_vm3, %v691_v27 }
 0x1db   : > { %s1630_s26 = smov (!%p709_p8, %s708_s26), 5 }
 0x1dc   : > { %s962_s13 = sshll.u32 %s1630_s26, 7 }
 0x1dd   : > { %p965_p9 = scmp.eq.s32.totalorder %s962_s13, 0 }
 0x1de   : > { %1231 = sdivrem.u32 (!%p965_p9), %s1630_s26, 5 }
 0x1df   : > { %717 = sbr.rel (%p965_p9) target bundleno = 536 (0x218), region = 56 }
 0x1e7   : > { %s1571_s10 = spop.drf %1231 }
 0x1e8   : > { %p966_p10 = scmp.le.s32.totalorder %s1571_s10, 0 }
 0x1e9   : > { %s1623_s6 = smov (!%p966_p10), %s1565_s8  ;;  %s1624_s17 = smov (!%p966_p10), %s1546_s15 }
 0x1ea   : > { %895 = sbr.rel (%p966_p10) target bundleno = 507 (0x1fb), region = 135  ;;  %s1580_s20 = smov (!%p966_p10), 0  }
 0x1eb   : > { %s1582_s21 = smov (!%p966_p10), 0  }
 0x1f1 LB: >> { %v789_v29 = vld [vmem:[%s1297_s17] sm:$0xff]  ;;  %v791_v30 = vld [vmem:[%s1297_s17 + $0x8] sm:$0xff]  ;;  %v793_v31 = vld [vmem:[%s1297_s17 + $0x10] sm:$0xff]  ;;  %s799_s22 = sadd.s32 1, %s1301_s20  ;;  %s783_s21 = sadd.s32 1, %s1305_s21   ;;  %s1305_s21 = sphi %s1582_s21, %s783_s21   ;;  %s1301_s20 = sphi %s1580_s20, %s1625_s20   ;;  %s1297_s17 = sphi %s1624_s17, %s804_s17   ;;  %s1293_s6 = sphi %s1623_s6, %s805_s6  }
 0x1f2   : >> { %790 = vst [vmem:[%s1293_s6] sm:$0xff] %v789_v29  ;;  %792 = vst [vmem:[%s1293_s6 + $0x8] sm:$0xff] %v791_v30  ;;  %v795_v32 = vld [vmem:[%s1297_s17 + $0x18] sm:$0xff]  ;;  %v797_v33 = vld [vmem:[%s1297_s17 + $0x20] sm:$0xff]  ;;  %p800_p11 = scmp.ge.s32.totalorder %s799_s22, %s1571_s10  ;;  %p782_p12 = scmp.ge.s32.totalorder %s783_s21, %s1571_s10 }
 0x1f3   : >> { %794 = vst [vmem:[%s1293_s6 + $0x10] sm:$0xff] %v793_v31  ;;  %796 = vst [vmem:[%s1293_s6 + $0x18] sm:$0xff] %v795_v32 }
 0x1f4   : >> { %798 = vst [vmem:[%s1293_s6 + $0x20] sm:$0xff] %v797_v33  ;;  %s1632_s22 = smov (%p800_p11, %s799_s22), 0  ;;  %785 = sbr.rel (!%p782_p12) target bundleno = 497 (0x1f1), region = 141 }
 0x1f5   : >> { %s802_s23 = smul.u32 40, %s1632_s22  ;;  %s1625_s20 = smov %s1632_s22 }
 0x1f7   : >> { %s804_s17 = scalar_lea.vmem %s1546_s15, %s802_s23 [#allocation3]   ;;  %s805_s6 = scalar_lea.vmem %s1565_s8, %s802_s23  }
 0x1fb PF: > { %1233 = sdivrem.u32 %s1630_s26, 5 }
 0x1fc   : > { %s967_s24 = smul.u32 40, %s1571_s10 }
 0x1fe   : > { %s810_s25 = scalar_lea.vmem %s1546_s15, %s967_s24 [#allocation3]   ;;  %s812_s28 = scalar_lea.vmem %s1565_s8, %s967_s24  }
 0x204   : > { %s1234_s30 = spop.drf %1233 }
 0x205   : > { %p969_p13 = scmp.le.s32.totalorder %s1234_s30, 0 }
 0x206   : > { %s1307_s11 = smov (!%p969_p13), %s812_s28   ;;  %s1311_s12 = smov (!%p969_p13), %s810_s25  }
 0x207   : > { %909 = sbr.rel (%p969_p13) target bundleno = 536 (0x218), region = 146  ;;  %s1315_s14 = smov (!%p969_p13), 0  }
 0x208   : > { %s1319_s16 = smov (!%p969_p13), 0  }
 0x20e LB: >> { %v822_v34 = vld [vmem:[%s1313_s12] sm:$0xff]  ;;  %s824_s18 = sadd.s32 1, %s1317_s14  ;;  %s816_s16 = sadd.s32 1, %s1321_s16   ;;  %s1321_s16 = sphi %s1319_s16, %s816_s16   ;;  %s1317_s14 = sphi %s1315_s14, %s1316_s14   ;;  %s1313_s12 = sphi %s1311_s12, %s829_s12   ;;  %s1309_s11 = sphi %s1307_s11, %s830_s11  }
 0x20f   : >> { %823 = vst [vmem:[%s1309_s11] sm:$0xff] %v822_v34  ;;  %p825_p0 = scmp.ge.s32.totalorder %s824_s18, %s1234_s30  ;;  %p815_p1 = scmp.ge.s32.totalorder %s816_s16, %s1234_s30 }
 0x211   : >> { %s1634_s18 = smov (%p825_p0, %s824_s18), 0  ;;  %818 = sbr.rel (!%p815_p1) target bundleno = 526 (0x20e), region = 152 }
 0x212   : >> { %s970_s15 = sshll.u32 %s1634_s18, 3  ;;  %s1316_s14 = smov %s1634_s18  }
 0x213   : >> { %s829_s12 = scalar_lea.vmem %s810_s25, %s970_s15 [#allocation3]   ;;  %s830_s11 = scalar_lea.vmem %s812_s28, %s970_s15  }
 0x218 PF: > { %p15_p2 = scmp.ge.s32.totalorder %s1384_s29, 4   ;;  %s1626_s26 = smov %s1285_s27 }
 0x219   : > { %s1627_s27 = smov %s1392_s9  ;;  %s1628_s28 = smov %s1384_s29 }
 0x21a   :  { %17 = sbr.rel (!%p15_p2) target bundleno = 4 (0x4), region = 163 }

</bundles_post_ra>
